<compile_context>
chip_gen: v6e
topology: v6e:2x2x1
jax: 0.10.0
libtpu: 0.0.40
codegen_flags: <defaults>
</compile_context>

<pallas_src>
import math

import jax
import jax.numpy as jnp
from jax import lax
from jax.experimental import pallas as pl
from jax.experimental.pallas import tpu as pltpu


# --------------------------------------------------------------------------- #
# Kernel
# --------------------------------------------------------------------------- #
def _flash_mha_kernel(xq_ref, xkv_ref, wq_ref, bq_ref, wk_ref, bk_ref,
                      wv_ref, bv_ref, wo_ref, bo_ref, o_ref,
                      q_sc, m_sc, l_sc, acc_sc):
    h = pl.program_id(2)
    ki = pl.program_id(3)
    nk = pl.num_programs(3)

    # Initialize the resident (TQ, D) output block with the output bias, once per
    # (batch, query-block); per-head contributions are accumulated into it.
    @pl.when((h == 0) & (ki == 0))
    def _init_out():
        o_ref[0] = jnp.broadcast_to(
            bo_ref[...], (o_ref.shape[1], o_ref.shape[2])).astype(o_ref.dtype)

    # Per (query-block, head): project Q once (scale already folded into Wq/bq)
    # and reset the online-softmax state.
    @pl.when(ki == 0)
    def _init_head():
        q = jnp.dot(xq_ref[0], wq_ref[0], preferred_element_type=jnp.float32)
        q_sc[...] = (q + bq_ref[0]).astype(q_sc.dtype)            # (TQ, d_k) bf16
        m_sc[...] = jnp.full_like(m_sc, -jnp.inf)
        l_sc[...] = jnp.zeros_like(l_sc)
        acc_sc[...] = jnp.zeros_like(acc_sc)

    # K / V projections for this (head, kv-block): bf16 inputs, f32 accumulate.
    xkv = xkv_ref[0]                                              # (TK, D) bf16
    k = (jnp.dot(xkv, wk_ref[0], preferred_element_type=jnp.float32)
         + bk_ref[0]).astype(jnp.bfloat16)                        # (TK, d_k)
    v = (jnp.dot(xkv, wv_ref[0], preferred_element_type=jnp.float32)
         + bv_ref[0]).astype(jnp.bfloat16)                        # (TK, d_k)

    # Scores: contract the d_k axis of both operands (no K transpose).
    s = lax.dot_general(q_sc[...], k, (((1,), (1,)), ((), ())),
                        preferred_element_type=jnp.float32)       # (TQ, TK)

    # Online softmax update (f32).
    m_new = jnp.maximum(m_sc[...], jnp.max(s, axis=-1, keepdims=True))
    alpha = jnp.exp(m_sc[...] - m_new)
    p = jnp.exp(s - m_new)
    l_sc[...] = alpha * l_sc[...] + jnp.sum(p, axis=-1, keepdims=True)
    acc_sc[...] = alpha * acc_sc[...] + jnp.dot(
        p.astype(jnp.bfloat16), v, preferred_element_type=jnp.float32)
    m_sc[...] = m_new

    # Last KV block of this head: normalize and fold the head's context through
    # its (d_k, D) slab of Wo^T, accumulating into the output block.
    @pl.when(ki == nk - 1)
    def _finalize_head():
        ctx = acc_sc[...] * pl.reciprocal(l_sc[...], approx=True)  # (TQ, d_k) f32
        o_ref[0] += jnp.dot(ctx.astype(jnp.bfloat16), wo_ref[0],
                            preferred_element_type=jnp.float32).astype(o_ref.dtype)


# --------------------------------------------------------------------------- #
# Wrapper
# --------------------------------------------------------------------------- #
def _pick_block(n, target=128):
    """Largest tile <= target that divides n and is sublane-aligned, else n."""
    if n <= target:
        return n
    for t in range(target, 7, -8):
        if t % 8 == 0 and n % t == 0:
            return t
    return n


def _round_up(a, m):
    return ((a + m - 1) // m) * m


def _tile_bytes(shape, itemsize):
    """Conservative VMEM bytes for one pipeline buffer of `shape` (8,128 padded)."""
    if len(shape) == 1:
        lead, r, c = 1, 1, shape[0]
    else:
        lead = 1
        for s in shape[:-2]:
            lead *= s
        r, c = shape[-2], shape[-1]
    return lead * _round_up(r, 8) * _round_up(c, 128) * itemsize


def _prepare_params(params, num_heads):
    """Pre-transpose, head-split and scale-fold the projection weights (bf16)."""
    D = params["wq"].shape[0]
    d_k = D // num_heads
    scale = 1.0 / math.sqrt(d_k)

    def head_split(w, b):
        # q = x @ w.T + b ; head h owns output columns [h*d_k : (h+1)*d_k].
        w3 = w.T.reshape(D, num_heads, d_k).transpose(1, 0, 2)    # (H, D, d_k)
        b3 = b.reshape(num_heads, 1, d_k)                         # (H, 1, d_k)
        return w3.astype(jnp.bfloat16), b3.astype(jnp.float32)

    wq3, bq3 = head_split(params["wq"] * scale, params["bq"] * scale)
    wk3, bk3 = head_split(params["wk"], params["bk"])
    wv3, bv3 = head_split(params["wv"], params["bv"])
    # out = concat_h(ctx_h) @ Wo^T + bo = sum_h ctx_h @ Wo^T[h*d_k:(h+1)*d_k, :] + bo
    wo3 = params["wo"].T.reshape(num_heads, d_k, D).astype(jnp.bfloat16)   # (H, d_k, D)
    bo2 = params["bo"].reshape(1, D).astype(jnp.float32)
    return wq3, bq3, wk3, bk3, wv3, bv3, wo3, bo2


def attention1d_pallas(x_ncl, params, *, num_heads, tq=128, tk=128):
    """x_ncl: (B, d_model, L) float32 -- PyTorch NCL layout."""
    B, D, L = x_ncl.shape
    assert D % num_heads == 0, "d_model must be divisible by num_heads"
    d_k = D // num_heads

    TQ = _pick_block(L, tq)
    TK = _pick_block(L, tk)
    n_q = L // TQ
    n_k = L // TK

    # Single layout pass: NCL -> NLD fused with the f32 -> bf16 cast.
    x_bld = jnp.transpose(x_ncl, (0, 2, 1)).astype(jnp.bfloat16)

    wq3, bq3, wk3, bk3, wv3, bv3, wo3, bo2 = _prepare_params(params, num_heads)

    def at_qblock(b, qi, h, ki):
        return (b, qi, 0)

    def at_kvblock(b, qi, h, ki):
        return (b, ki, 0)

    def at_head(b, qi, h, ki):
        return (h, 0, 0)

    in_specs = [
        pl.BlockSpec((1, TQ, D), at_qblock),                      # x (query view)
        pl.BlockSpec((1, TK, D), at_kvblock),                     # x (key/value view)
        pl.BlockSpec((1, D, d_k), at_head),                       # Wq^T head slab (scaled)
        pl.BlockSpec((1, 1, d_k), at_head),                       # bq head slab (scaled)
        pl.BlockSpec((1, D, d_k), at_head),                       # Wk^T head slab
        pl.BlockSpec((1, 1, d_k), at_head),                       # bk head slab
        pl.BlockSpec((1, D, d_k), at_head),                       # Wv^T head slab
        pl.BlockSpec((1, 1, d_k), at_head),                       # bv head slab
        pl.BlockSpec((1, d_k, D), at_head),                       # Wo^T head slab
        pl.BlockSpec((1, D), lambda b, qi, h, ki: (0, 0)),        # bo (grid-invariant)
    ]
    out_specs = pl.BlockSpec((1, TQ, D), at_qblock)

    scratch_shapes = [
        pltpu.VMEM((TQ, d_k), jnp.bfloat16),   # projected Q (per query-block, per head)
        pltpu.VMEM((TQ, 1), jnp.float32),      # running max
        pltpu.VMEM((TQ, 1), jnp.float32),      # running denominator
        pltpu.VMEM((TQ, d_k), jnp.float32),    # context accumulator
    ]

    # Explicit VMEM budget: double-buffered pipeline blocks + scratch, 3x headroom,
    # floored at the default scoped limit (tiny problems) and capped well below
    # v7x's 64 MiB physical VMEM per TensorCore.
    dbl = 2 * (
        _tile_bytes((1, TQ, D), 2) + _tile_bytes((1, TK, D), 2)
        + 3 * (_tile_bytes((1, D, d_k), 2) + _tile_bytes((1, 1, d_k), 4))
        + _tile_bytes((1, d_k, D), 2) + _tile_bytes((1, D), 4)
        + _tile_bytes((1, TQ, D), 4)
    )
    scr = (_tile_bytes((TQ, d_k), 2) + 2 * _tile_bytes((TQ, 1), 4)
           + _tile_bytes((TQ, d_k), 4))
    vmem_limit = int(max(32 * 1024 * 1024, min(3 * (dbl + scr), 60 * 1024 * 1024)))

    grid_spec = pltpu.PrefetchScalarGridSpec(
        num_scalar_prefetch=0,
        grid=(B, n_q, num_heads, n_k),
        in_specs=in_specs,
        out_specs=out_specs,
        scratch_shapes=scratch_shapes,
    )

    out_bld = pl.pallas_call(
        _flash_mha_kernel,
        out_shape=jax.ShapeDtypeStruct((B, L, D), jnp.float32),
        grid_spec=grid_spec,
        compiler_params=pltpu.CompilerParams(
            dimension_semantics=("parallel", "parallel", "arbitrary", "arbitrary"),
            vmem_limit_bytes=vmem_limit,
        ),
    )(x_bld, x_bld, wq3, bq3, wk3, bk3, wv3, bv3, wo3, bo2)

    # Back to the module's external NCL contract.
    return jnp.transpose(out_bld, (0, 2, 1))


# --------------------------------------------------------------------------- #
# Pure-JAX reference (f32) mirroring nn.MultiheadAttention in eval mode
# --------------------------------------------------------------------------- #
def attention1d_reference(x_ncl, params, *, num_heads):
    B, D, L = x_ncl.shape
    d_k = D // num_heads
    x = jnp.transpose(x_ncl, (0, 2, 1))                    # (B, L, D)
    q = x @ params["wq"].T + params["bq"]
    k = x @ params["wk"].T + params["bk"]
    v = x @ params["wv"].T + params["bv"]

    def split(t):  # (B, L, D) -> (B, H, L, d_k)
        return jnp.transpose(t.reshape(B, L, num_heads, d_k), (0, 2, 1, 3))

    qh, kh, vh = split(q), split(k), split(v)
    s = jnp.einsum("bhqd,bhkd->bhqk", qh, kh) / math.sqrt(d_k)
    p = jax.nn.softmax(s, axis=-1)
    ctx = jnp.einsum("bhqk,bhkd->bhqd", p, vh)
    ctx = jnp.transpose(ctx, (0, 2, 1, 3)).reshape(B, L, D)
    out = ctx @ params["wo"].T + params["bo"]
    return jnp.transpose(out, (0, 2, 1))


def init_params(key, d_model):
    """Deterministic synthetic init matching nn.MultiheadAttention shapes."""
    k1, k2, k3, k4 = jax.random.split(key, 4)
    scale = 1.0 / math.sqrt(d_model)
    in_proj_w = jax.random.uniform(k1, (3 * d_model, d_model),
                                   minval=-scale, maxval=scale, dtype=jnp.float32)
    in_proj_b = jax.random.uniform(k2, (3 * d_model,),
                                   minval=-scale, maxval=scale, dtype=jnp.float32)
    out_w = jax.random.uniform(k3, (d_model, d_model),
                               minval=-scale, maxval=scale, dtype=jnp.float32)
    out_b = jax.random.uniform(k4, (d_model,),
                               minval=-scale, maxval=scale, dtype=jnp.float32)
    return {
        "wq": in_proj_w[:d_model],
        "wk": in_proj_w[d_model:2 * d_model],
        "wv": in_proj_w[2 * d_model:],
        "bq": in_proj_b[:d_model],
        "bk": in_proj_b[d_model:2 * d_model],
        "bv": in_proj_b[2 * d_model:],
        "wo": out_w,
        "bo": out_b,
    }


if __name__ == "__main__":
    B, d_model, L = 2, 32, 16
    num_heads = 4

    key = jax.random.PRNGKey(0)
    kx, kp = jax.random.split(key)
    x = jax.random.normal(kx, (B, d_model, L), dtype=jnp.float32)   # NCL like PyTorch
    params = init_params(kp, d_model)

    out = attention1d_pallas(x, params, num_heads=num_heads)
    out = jax.block_until_ready(out)

    ref = attention1d_reference(x, params, num_heads=num_heads)
    assert out.shape == (B, d_model, L), out.shape
    # bf16 matmul inputs + approximate reciprocal -> loosened tolerance vs f32 ref.
    assert jnp.allclose(out, ref, atol=3e-2, rtol=3e-2), \
        float(jnp.max(jnp.abs(out - ref)))

    print("KERNEL_OK")
</pallas_src>

<mosaic_0001>
module attributes {stable_mosaic.version = 11 : i64} {
  func.func @_flash_mha_kernel(%arg0: i32, %arg1: i32, %arg2: i32, %arg3: i32, %arg4: memref<1x16x32xbf16, #tpu.memory_space<vmem>>, %arg5: memref<1x16x32xbf16, #tpu.memory_space<vmem>>, %arg6: memref<1x32x8xbf16, #tpu.memory_space<vmem>>, %arg7: memref<1x1x8xf32, #tpu.memory_space<vmem>>, %arg8: memref<1x32x8xbf16, #tpu.memory_space<vmem>>, %arg9: memref<1x1x8xf32, #tpu.memory_space<vmem>>, %arg10: memref<1x32x8xbf16, #tpu.memory_space<vmem>>, %arg11: memref<1x1x8xf32, #tpu.memory_space<vmem>>, %arg12: memref<1x8x32xbf16, #tpu.memory_space<vmem>>, %arg13: memref<1x32xf32, #tpu.memory_space<vmem>>, %arg14: memref<1x16x32xf32, #tpu.memory_space<vmem>>, %arg15: memref<16x8xbf16, #tpu.memory_space<vmem>>, %arg16: memref<16x1xf32, #tpu.memory_space<vmem>>, %arg17: memref<16x1xf32, #tpu.memory_space<vmem>>, %arg18: memref<16x8xf32, #tpu.memory_space<vmem>>) attributes {dimension_semantics = [#tpu.dimension_semantics<parallel>, #tpu.dimension_semantics<parallel>, #tpu.dimension_semantics<arbitrary>, #tpu.dimension_semantics<arbitrary>], iteration_bounds = array<i64: 2, 1, 4, 1>, scalar_prefetch = 0 : i64, scratch_operands = 4 : i64, tpu.core_type = #tpu.core_type<tc>, window_params = [{transform_indices = @transform_0, window_bounds = array<i64: 1, 16, 32>}, {transform_indices = @transform_1, window_bounds = array<i64: 1, 16, 32>}, {transform_indices = @transform_2, window_bounds = array<i64: 1, 32, 8>}, {transform_indices = @transform_3, window_bounds = array<i64: 1, 1, 8>}, {transform_indices = @transform_4, window_bounds = array<i64: 1, 32, 8>}, {transform_indices = @transform_5, window_bounds = array<i64: 1, 1, 8>}, {transform_indices = @transform_6, window_bounds = array<i64: 1, 32, 8>}, {transform_indices = @transform_7, window_bounds = array<i64: 1, 1, 8>}, {transform_indices = @transform_8, window_bounds = array<i64: 1, 8, 32>}, {pipeline_mode = #tpu.pipeline_mode<synchronous>, transform_indices = @transform_9, window_bounds = array<i64: 1, 32>}, {transform_indices = @transform_10, window_bounds = array<i64: 1, 16, 32>}]} {
    %c0_i32 = arith.constant 0 : i32
    %0 = arith.cmpi eq, %arg2, %c0_i32 : i32
    %c0_i32_0 = arith.constant 0 : i32
    %1 = arith.cmpi eq, %arg3, %c0_i32_0 : i32
    %2 = arith.andi %0, %1 : i1
    %3 = arith.extui %2 : i1 to i32
    %c0_i32_1 = arith.constant 0 : i32
    %4 = arith.cmpi ne, %3, %c0_i32_1 : i32
    scf.if %4 {
      %c0_41 = arith.constant 0 : index
      %c0_42 = arith.constant 0 : index
      %55 = vector.load %arg13[%c0_41, %c0_42] : memref<1x32xf32, #tpu.memory_space<vmem>>, vector<1x32xf32>
      %56 = vector.shape_cast %55 : vector<1x32xf32> to vector<1x32xf32>
      %57 = vector.broadcast %56 : vector<1x32xf32> to vector<16x32xf32>
      %c0_43 = arith.constant 0 : index
      %c0_44 = arith.constant 0 : index
      %c0_45 = arith.constant 0 : index
      %58 = vector.load %arg14[%c0_43, %c0_44, %c0_45] : memref<1x16x32xf32, #tpu.memory_space<vmem>>, vector<1x16x32xf32>
      %59 = vector.shape_cast %58 : vector<1x16x32xf32> to vector<16x32xf32>
      %60 = vector.shape_cast %57 : vector<16x32xf32> to vector<1x16x32xf32>
      tpu.vector_store %arg14[%c0_43, %c0_44, %c0_45], %60 {strides = array<i32>} : memref<1x16x32xf32, #tpu.memory_space<vmem>>, vector<1x16x32xf32>,
    } else {
    }
    %c0_i32_2 = arith.constant 0 : i32
    %5 = arith.cmpi eq, %arg3, %c0_i32_2 : i32
    %6 = arith.extui %5 : i1 to i32
    %c0_i32_3 = arith.constant 0 : i32
    %7 = arith.cmpi ne, %6, %c0_i32_3 : i32
    scf.if %7 {
      %c0_41 = arith.constant 0 : index
      %c0_42 = arith.constant 0 : index
      %c0_43 = arith.constant 0 : index
      %55 = vector.load %arg4[%c0_41, %c0_42, %c0_43] : memref<1x16x32xbf16, #tpu.memory_space<vmem>>, vector<1x16x32xbf16>
      %56 = vector.shape_cast %55 : vector<1x16x32xbf16> to vector<16x32xbf16>
      %c0_44 = arith.constant 0 : index
      %c0_45 = arith.constant 0 : index
      %c0_46 = arith.constant 0 : index
      %57 = vector.load %arg6[%c0_44, %c0_45, %c0_46] : memref<1x32x8xbf16, #tpu.memory_space<vmem>>, vector<1x32x8xbf16>
      %58 = vector.shape_cast %57 : vector<1x32x8xbf16> to vector<32x8xbf16>
      %cst_47 = arith.constant dense<0.000000e+00> : vector<16x8xf32>
      %59 = tpu.matmul %56, %58, %cst_47 {dimension_numbers = #tpu.dot_dimension_numbers<[1], [0], [0], [1], [0, 0, 1, 1], [], []>} : vector<16x32xbf16>, vector<32x8xbf16>, vector<16x8xf32> -> vector<16x8xf32>
      %c0_48 = arith.constant 0 : index
      %c0_49 = arith.constant 0 : index
      %c0_50 = arith.constant 0 : index
      %60 = vector.load %arg7[%c0_48, %c0_49, %c0_50] : memref<1x1x8xf32, #tpu.memory_space<vmem>>, vector<1x1x8xf32>
      %61 = vector.shape_cast %60 : vector<1x1x8xf32> to vector<1x8xf32>
      %62 = vector.broadcast %61 : vector<1x8xf32> to vector<16x8xf32>
      %63 = arith.addf %59, %62 : vector<16x8xf32>
      %64 = arith.truncf %63 : vector<16x8xf32> to vector<16x8xbf16>
      %c0_51 = arith.constant 0 : index
      %c0_52 = arith.constant 0 : index
      %65 = vector.load %arg15[%c0_51, %c0_52] : memref<16x8xbf16, #tpu.memory_space<vmem>>, vector<16x8xbf16>
      tpu.vector_store %arg15[%c0_51, %c0_52], %64 {strides = array<i32>} : memref<16x8xbf16, #tpu.memory_space<vmem>>, vector<16x8xbf16>,
      %cst_53 = arith.constant 0xFF800000 : f32
      %66 = vector.broadcast %cst_53 : f32 to vector<16x1xf32>
      %c0_54 = arith.constant 0 : index
      %c0_55 = arith.constant 0 : index
      %67 = vector.load %arg16[%c0_54, %c0_55] : memref<16x1xf32, #tpu.memory_space<vmem>>, vector<16x1xf32>
      tpu.vector_store %arg16[%c0_54, %c0_55], %66 {strides = array<i32>} : memref<16x1xf32, #tpu.memory_space<vmem>>, vector<16x1xf32>,
      %cst_56 = arith.constant 0.000000e+00 : f32
      %68 = vector.broadcast %cst_56 : f32 to vector<16x1xf32>
      %c0_57 = arith.constant 0 : index
      %c0_58 = arith.constant 0 : index
      %69 = vector.load %arg17[%c0_57, %c0_58] : memref<16x1xf32, #tpu.memory_space<vmem>>, vector<16x1xf32>
      tpu.vector_store %arg17[%c0_57, %c0_58], %68 {strides = array<i32>} : memref<16x1xf32, #tpu.memory_space<vmem>>, vector<16x1xf32>,
      %cst_59 = arith.constant 0.000000e+00 : f32
      %70 = vector.broadcast %cst_59 : f32 to vector<16x8xf32>
      %c0_60 = arith.constant 0 : index
      %c0_61 = arith.constant 0 : index
      %71 = vector.load %arg18[%c0_60, %c0_61] : memref<16x8xf32, #tpu.memory_space<vmem>>, vector<16x8xf32>
      tpu.vector_store %arg18[%c0_60, %c0_61], %70 {strides = array<i32>} : memref<16x8xf32, #tpu.memory_space<vmem>>, vector<16x8xf32>,
    } else {
    }
    %c0 = arith.constant 0 : index
    %c0_4 = arith.constant 0 : index
    %c0_5 = arith.constant 0 : index
    %8 = vector.load %arg5[%c0, %c0_4, %c0_5] : memref<1x16x32xbf16, #tpu.memory_space<vmem>>, vector<1x16x32xbf16>
    %9 = vector.shape_cast %8 : vector<1x16x32xbf16> to vector<16x32xbf16>
    %c0_6 = arith.constant 0 : index
    %c0_7 = arith.constant 0 : index
    %c0_8 = arith.constant 0 : index
    %10 = vector.load %arg8[%c0_6, %c0_7, %c0_8] : memref<1x32x8xbf16, #tpu.memory_space<vmem>>, vector<1x32x8xbf16>
    %11 = vector.shape_cast %10 : vector<1x32x8xbf16> to vector<32x8xbf16>
    %cst = arith.constant dense<0.000000e+00> : vector<16x8xf32>
    %12 = tpu.matmul %9, %11, %cst {dimension_numbers = #tpu.dot_dimension_numbers<[1], [0], [0], [1], [0, 0, 1, 1], [], []>} : vector<16x32xbf16>, vector<32x8xbf16>, vector<16x8xf32> -> vector<16x8xf32>
    %c0_9 = arith.constant 0 : index
    %c0_10 = arith.constant 0 : index
    %c0_11 = arith.constant 0 : index
    %13 = vector.load %arg9[%c0_9, %c0_10, %c0_11] : memref<1x1x8xf32, #tpu.memory_space<vmem>>, vector<1x1x8xf32>
    %14 = vector.shape_cast %13 : vector<1x1x8xf32> to vector<1x8xf32>
    %15 = vector.broadcast %14 : vector<1x8xf32> to vector<16x8xf32>
    %16 = arith.addf %12, %15 : vector<16x8xf32>
    %17 = arith.truncf %16 : vector<16x8xf32> to vector<16x8xbf16>
    %c0_12 = arith.constant 0 : index
    %c0_13 = arith.constant 0 : index
    %c0_14 = arith.constant 0 : index
    %18 = vector.load %arg10[%c0_12, %c0_13, %c0_14] : memref<1x32x8xbf16, #tpu.memory_space<vmem>>, vector<1x32x8xbf16>
    %19 = vector.shape_cast %18 : vector<1x32x8xbf16> to vector<32x8xbf16>
    %cst_15 = arith.constant dense<0.000000e+00> : vector<16x8xf32>
    %20 = tpu.matmul %9, %19, %cst_15 {dimension_numbers = #tpu.dot_dimension_numbers<[1], [0], [0], [1], [0, 0, 1, 1], [], []>} : vector<16x32xbf16>, vector<32x8xbf16>, vector<16x8xf32> -> vector<16x8xf32>
    %c0_16 = arith.constant 0 : index
    %c0_17 = arith.constant 0 : index
    %c0_18 = arith.constant 0 : index
    %21 = vector.load %arg11[%c0_16, %c0_17, %c0_18] : memref<1x1x8xf32, #tpu.memory_space<vmem>>, vector<1x1x8xf32>
    %22 = vector.shape_cast %21 : vector<1x1x8xf32> to vector<1x8xf32>
    %23 = vector.broadcast %22 : vector<1x8xf32> to vector<16x8xf32>
    %24 = arith.addf %20, %23 : vector<16x8xf32>
    %25 = arith.truncf %24 : vector<16x8xf32> to vector<16x8xbf16>
    %c0_19 = arith.constant 0 : index
    %c0_20 = arith.constant 0 : index
    %26 = vector.load %arg15[%c0_19, %c0_20] : memref<16x8xbf16, #tpu.memory_space<vmem>>, vector<16x8xbf16>
    %cst_21 = arith.constant dense<0.000000e+00> : vector<16x16xf32>
    %27 = tpu.matmul %26, %17, %cst_21 {dimension_numbers = #tpu.dot_dimension_numbers<[1], [1], [0], [0], [0, 0, 1, 0], [], []>} : vector<16x8xbf16>, vector<16x8xbf16>, vector<16x16xf32> -> vector<16x16xf32>
    %c0_22 = arith.constant 0 : index
    %c0_23 = arith.constant 0 : index
    %28 = vector.load %arg16[%c0_22, %c0_23] : memref<16x1xf32, #tpu.memory_space<vmem>>, vector<16x1xf32>
    %cst_24 = arith.constant dense<0xFF800000> : vector<16xf32>
    %29 = vector.multi_reduction <maximumf>, %27, %cst_24 [1] : vector<16x16xf32> to vector<16xf32>
    %30 = vector.shape_cast %29 : vector<16xf32> to vector<16x1xf32>
    %31 = arith.maximumf %28, %30 : vector<16x1xf32>
    %c0_25 = arith.constant 0 : index
    %c0_26 = arith.constant 0 : index
    %32 = vector.load %arg16[%c0_25, %c0_26] : memref<16x1xf32, #tpu.memory_space<vmem>>, vector<16x1xf32>
    %33 = arith.subf %32, %31 : vector<16x1xf32>
    %34 = math.exp %33 : vector<16x1xf32>
    %35 = vector.broadcast %31 : vector<16x1xf32> to vector<16x16xf32>
    %36 = arith.subf %27, %35 : vector<16x16xf32>
    %37 = math.exp %36 : vector<16x16xf32>
    %c0_27 = arith.constant 0 : index
    %c0_28 = arith.constant 0 : index
    %38 = vector.load %arg17[%c0_27, %c0_28] : memref<16x1xf32, #tpu.memory_space<vmem>>, vector<16x1xf32>
    %39 = arith.mulf %34, %38 : vector<16x1xf32>
    %cst_29 = arith.constant dense<0.000000e+00> : vector<16xf32>
    %40 = vector.multi_reduction <add>, %37, %cst_29 [1] : vector<16x16xf32> to vector<16xf32>
    %41 = vector.shape_cast %40 : vector<16xf32> to vector<16x1xf32>
    %42 = arith.addf %39, %41 : vector<16x1xf32>
    %c0_30 = arith.constant 0 : index
    %c0_31 = arith.constant 0 : index
    %43 = vector.load %arg17[%c0_30, %c0_31] : memref<16x1xf32, #tpu.memory_space<vmem>>, vector<16x1xf32>
    tpu.vector_store %arg17[%c0_30, %c0_31], %42 {strides = array<i32>} : memref<16x1xf32, #tpu.memory_space<vmem>>, vector<16x1xf32>,
    %c0_32 = arith.constant 0 : index
    %c0_33 = arith.constant 0 : index
    %44 = vector.load %arg18[%c0_32, %c0_33] : memref<16x8xf32, #tpu.memory_space<vmem>>, vector<16x8xf32>
    %45 = vector.broadcast %34 : vector<16x1xf32> to vector<16x8xf32>
    %46 = arith.mulf %45, %44 : vector<16x8xf32>
    %47 = arith.truncf %37 : vector<16x16xf32> to vector<16x16xbf16>
    %cst_34 = arith.constant dense<0.000000e+00> : vector<16x8xf32>
    %48 = tpu.matmul %47, %25, %cst_34 {dimension_numbers = #tpu.dot_dimension_numbers<[1], [0], [0], [1], [0, 0, 1, 1], [], []>} : vector<16x16xbf16>, vector<16x8xbf16>, vector<16x8xf32> -> vector<16x8xf32>
    %49 = arith.addf %46, %48 : vector<16x8xf32>
    %c0_35 = arith.constant 0 : index
    %c0_36 = arith.constant 0 : index
    %50 = vector.load %arg18[%c0_35, %c0_36] : memref<16x8xf32, #tpu.memory_space<vmem>>, vector<16x8xf32>
    tpu.vector_store %arg18[%c0_35, %c0_36], %49 {strides = array<i32>} : memref<16x8xf32, #tpu.memory_space<vmem>>, vector<16x8xf32>,
    %c0_37 = arith.constant 0 : index
    %c0_38 = arith.constant 0 : index
    %51 = vector.load %arg16[%c0_37, %c0_38] : memref<16x1xf32, #tpu.memory_space<vmem>>, vector<16x1xf32>
    tpu.vector_store %arg16[%c0_37, %c0_38], %31 {strides = array<i32>} : memref<16x1xf32, #tpu.memory_space<vmem>>, vector<16x1xf32>,
    %c0_i32_39 = arith.constant 0 : i32
    %52 = arith.cmpi eq, %arg3, %c0_i32_39 : i32
    %53 = arith.extui %52 : i1 to i32
    %c0_i32_40 = arith.constant 0 : i32
    %54 = arith.cmpi ne, %53, %c0_i32_40 : i32
    scf.if %54 {
      %c0_41 = arith.constant 0 : index
      %c0_42 = arith.constant 0 : index
      %55 = vector.load %arg18[%c0_41, %c0_42] : memref<16x8xf32, #tpu.memory_space<vmem>>, vector<16x8xf32>
      %c0_43 = arith.constant 0 : index
      %c0_44 = arith.constant 0 : index
      %56 = vector.load %arg17[%c0_43, %c0_44] : memref<16x1xf32, #tpu.memory_space<vmem>>, vector<16x1xf32>
      %57 = tpu.reciprocal %56 {approx = true} : vector<16x1xf32> -> vector<16x1xf32>
      %58 = vector.broadcast %57 : vector<16x1xf32> to vector<16x8xf32>
      %59 = arith.mulf %55, %58 : vector<16x8xf32>
      %c0_45 = arith.constant 0 : index
      %c0_46 = arith.constant 0 : index
      %c0_47 = arith.constant 0 : index
      %60 = vector.load %arg14[%c0_45, %c0_46, %c0_47] : memref<1x16x32xf32, #tpu.memory_space<vmem>>, vector<1x16x32xf32>
      %61 = vector.shape_cast %60 : vector<1x16x32xf32> to vector<16x32xf32>
      %62 = arith.truncf %59 : vector<16x8xf32> to vector<16x8xbf16>
      %c0_48 = arith.constant 0 : index
      %c0_49 = arith.constant 0 : index
      %c0_50 = arith.constant 0 : index
      %63 = vector.load %arg12[%c0_48, %c0_49, %c0_50] : memref<1x8x32xbf16, #tpu.memory_space<vmem>>, vector<1x8x32xbf16>
      %64 = vector.shape_cast %63 : vector<1x8x32xbf16> to vector<8x32xbf16>
      %cst_51 = arith.constant dense<0.000000e+00> : vector<16x32xf32>
      %65 = tpu.matmul %62, %64, %cst_51 {dimension_numbers = #tpu.dot_dimension_numbers<[1], [0], [0], [1], [0, 0, 1, 1], [], []>} : vector<16x8xbf16>, vector<8x32xbf16>, vector<16x32xf32> -> vector<16x32xf32>
      %66 = arith.addf %61, %65 : vector<16x32xf32>
      %c0_52 = arith.constant 0 : index
      %c0_53 = arith.constant 0 : index
      %c0_54 = arith.constant 0 : index
      %67 = vector.load %arg14[%c0_52, %c0_53, %c0_54] : memref<1x16x32xf32, #tpu.memory_space<vmem>>, vector<1x16x32xf32>
      %68 = vector.shape_cast %67 : vector<1x16x32xf32> to vector<16x32xf32>
      %69 = vector.shape_cast %66 : vector<16x32xf32> to vector<1x16x32xf32>
      tpu.vector_store %arg14[%c0_52, %c0_53, %c0_54], %69 {strides = array<i32>} : memref<1x16x32xf32, #tpu.memory_space<vmem>>, vector<1x16x32xf32>,
    } else {
    }
    return
  }
  func.func @transform_0(%arg0: i32, %arg1: i32, %arg2: i32, %arg3: i32) -> (i32, i32, i32) {
    %c0_i32 = arith.constant 0 : i32
    %c0_i32_0 = arith.constant 0 : i32
    return %arg0, %arg1, %c0_i32 : i32, i32, i32
  }
  func.func @transform_1(%arg0: i32, %arg1: i32, %arg2: i32, %arg3: i32) -> (i32, i32, i32) {
    %c0_i32 = arith.constant 0 : i32
    %c0_i32_0 = arith.constant 0 : i32
    return %arg0, %arg3, %c0_i32 : i32, i32, i32
  }
  func.func @transform_2(%arg0: i32, %arg1: i32, %arg2: i32, %arg3: i32) -> (i32, i32, i32) {
    %c0_i32 = arith.constant 0 : i32
    %c0_i32_0 = arith.constant 0 : i32
    %c0_i32_1 = arith.constant 0 : i32
    return %arg2, %c0_i32, %c0_i32_0 : i32, i32, i32
  }
  func.func @transform_3(%arg0: i32, %arg1: i32, %arg2: i32, %arg3: i32) -> (i32, i32, i32) {
    %c0_i32 = arith.constant 0 : i32
    %c0_i32_0 = arith.constant 0 : i32
    %c0_i32_1 = arith.constant 0 : i32
    return %arg2, %c0_i32, %c0_i32_0 : i32, i32, i32
  }
  func.func @transform_4(%arg0: i32, %arg1: i32, %arg2: i32, %arg3: i32) -> (i32, i32, i32) {
    %c0_i32 = arith.constant 0 : i32
    %c0_i32_0 = arith.constant 0 : i32
    %c0_i32_1 = arith.constant 0 : i32
    return %arg2, %c0_i32, %c0_i32_0 : i32, i32, i32
  }
  func.func @transform_5(%arg0: i32, %arg1: i32, %arg2: i32, %arg3: i32) -> (i32, i32, i32) {
    %c0_i32 = arith.constant 0 : i32
    %c0_i32_0 = arith.constant 0 : i32
    %c0_i32_1 = arith.constant 0 : i32
    return %arg2, %c0_i32, %c0_i32_0 : i32, i32, i32
  }
  func.func @transform_6(%arg0: i32, %arg1: i32, %arg2: i32, %arg3: i32) -> (i32, i32, i32) {
    %c0_i32 = arith.constant 0 : i32
    %c0_i32_0 = arith.constant 0 : i32
    %c0_i32_1 = arith.constant 0 : i32
    return %arg2, %c0_i32, %c0_i32_0 : i32, i32, i32
  }
  func.func @transform_7(%arg0: i32, %arg1: i32, %arg2: i32, %arg3: i32) -> (i32, i32, i32) {
    %c0_i32 = arith.constant 0 : i32
    %c0_i32_0 = arith.constant 0 : i32
    %c0_i32_1 = arith.constant 0 : i32
    return %arg2, %c0_i32, %c0_i32_0 : i32, i32, i32
  }
  func.func @transform_8(%arg0: i32, %arg1: i32, %arg2: i32, %arg3: i32) -> (i32, i32, i32) {
    %c0_i32 = arith.constant 0 : i32
    %c0_i32_0 = arith.constant 0 : i32
    %c0_i32_1 = arith.constant 0 : i32
    return %arg2, %c0_i32, %c0_i32_0 : i32, i32, i32
  }
  func.func @transform_9(%arg0: i32, %arg1: i32, %arg2: i32, %arg3: i32) -> (i32, i32) {
    %c0_i32 = arith.constant 0 : i32
    %c0_i32_0 = arith.constant 0 : i32
    %c0_i32_1 = arith.constant 0 : i32
    return %c0_i32, %c0_i32_0 : i32, i32
  }
  func.func @transform_10(%arg0: i32, %arg1: i32, %arg2: i32, %arg3: i32) -> (i32, i32, i32) {
    %c0_i32 = arith.constant 0 : i32
    %c0_i32_0 = arith.constant 0 : i32
    return %arg0, %arg1, %c0_i32 : i32, i32, i32
  }
}

</mosaic_0001>

<bundles_post_ra>
// kernel: tpu_custom_call.1
= control target key start
LH: loop header
LB: loop body
LE: loop exit
PB: predicated region body
PF: predicated region fallthrough
CT: control target
= control target key end

     0   :  { %s1885_s0 = inlined_call_operand.vmem [shape: bf16[2,16,32], index: 0, kind: input, shape index: {}]   ;;  %s1886_s1 = inlined_call_operand.vmem [shape: bf16[2,16,32], index: 1, kind: input, shape index: {}]   ;;  %s1887_s2 = inlined_call_operand.vmem [shape: bf16[4,32,8], index: 2, kind: input, shape index: {}]   ;;  %s1888_s3 = inlined_call_operand.vmem [shape: f32[4,1,8], index: 3, kind: input, shape index: {}]   ;;  %s1889_s4 = inlined_call_operand.vmem [shape: bf16[4,32,8], index: 4, kind: input, shape index: {}]   ;;  %s1890_s5 = inlined_call_operand.vmem [shape: f32[4,1,8], index: 5, kind: input, shape index: {}]   ;;  %s1891_s6 = inlined_call_operand.vmem [shape: bf16[4,32,8], index: 6, kind: input, shape index: {}]   ;;  %s1892_s7 = inlined_call_operand.vmem [shape: f32[4,1,8], index: 7, kind: input, shape index: {}]   ;;  %s1893_s8 = inlined_call_operand.vmem [shape: bf16[4,8,32], index: 8, kind: input, shape index: {}]   ;;  %s1894_s9 = inlined_call_operand.vmem [shape: f32[1,32], index: 9, kind: input, shape index: {}]   ;;  %s1895_s10 = inlined_call_operand.hbm [shape: f32[2,16,32], index: 10, kind: output, shape index: {}]  }
   0x1   :  { %1909 = sst [smem:[#allocation20_spill]] %s1885_s0 }
   0x2   :  { %1910 = sst [smem:[#allocation21_spill]] %s1886_s1 }
   0x3   :  { %1911 = sst [smem:[#allocation22_spill]] %s1887_s2 }
   0x4   :  { %1912 = sst [smem:[#allocation23_spill]] %s1895_s10 }
   0x5   :  { %15 = vsyncpa [#allocation7], 0 }
   0x6   :  { %17 = vsyncpa [#allocation7 + $0x1], 0  ;;  %s1621_s13 = smov 0   ;;  %s1623_s14 = smov 0  }
   0x7   :  { %s1625_s15 = smov 0   ;;  %s1627_s16 = smov 0  }
   0x8   :  { %s1629_s17 = smov 0   ;;  %s1631_s18 = smov 0  }
   0x9   :  { %s1633_s19 = smov 0   ;;  %s1635_s20 = smov 0  }
   0xa LB: > { %1913 = sst [smem:[#allocation9_spill]] %s1529_s13  ;;  %s1255_s21 = sadd.s32 4294967295, %s1557_s20   ;;  %s1557_s20 = sphi %s1635_s20, %s23_s20   ;;  %s1553_s19 = sphi %s1633_s19, %s1944_s19   ;;  %s1549_s18 = sphi %s1631_s18, %s1943_s18   ;;  %s1545_s17 = sphi %s1629_s17, %s1942_s17   ;;  %s1541_s16 = sphi %s1627_s16, %s1941_s16   ;;  %s1537_s15 = sphi %s1625_s15, %s1940_s15   ;;  %s1533_s14 = sphi %s1623_s14, %s1939_s14   ;;  %s1529_s13 = sphi %s1621_s13, %s1938_s13  }
   0xb   : > { %1914 = sst [smem:[#allocation10_spill]] %s1533_s14  ;;  %s1256_s22 = sadd.s32 4294967294, %s1557_s20  }
   0xc   : > { %1915 = sst [smem:[#allocation11_spill]] %s1537_s15  ;;  %s41_s23 = sadd.s32 1, %s1549_s18 }
   0xd   : > { %1916 = sst [smem:[#allocation12_spill]] %s1549_s18  ;;  %p43_p0 = scmp.ge.s32.totalorder %s41_s23, 4 }
   0xe   : > { %1917 = sst [smem:[#allocation13_spill]] %s1553_s19  ;;  %s49_s24 = sadd.s32 1, %s1553_s19 }
   0xf   : > { %1918 = sst [smem:[#allocation14_spill]] %s1557_s20  ;;  %p327_p1 = scmp.ne.s32.totalorder %s1537_s15, %s1533_s14 }
  0x10   : > { %p328_p2 = scmp.eq.s32.totalorder %s1255_s21, 7  ;;  %s1946_s23 = smov (%p43_p0, %s41_s23), 0 }
  0x11   : > { %1919 = sst [smem:[#allocation15_spill]] %s1946_s23  ;;  %s1948_s24 = smov (!%p43_p0, %s49_s24), %s1553_s19 }
  0x12   : > { %p1670_p3 = por %p328_p2, %p327_p1  ;;  %p333_p4 = scmp.ne.s32.totalorder %s1533_s14, %s1529_s13 }
  0x13   : > { %p51_p5 = scmp.ge.s32.totalorder %s1948_s24, 2  ;;  %p334_p6 = scmp.eq.s32.totalorder %s1256_s22, 7 }
  0x14   : > { %s1920_s25 = scalar_select %p1670_p3, 1, 0 }
  0x15   : > { %p1259_p7 = scmp.ge.s32.totalorder %s1557_s20, 1  ;;  %p430_p8 = scmp.lt.s32.totalorder %s1557_s20, 9 }
  0x16   : > { %1921 = sst [smem:[#allocation16_spill]] %s1920_s25  ;;  %s1950_s24 = smov (%p51_p5, %s1948_s24), 0 }
  0x17   : > { %1922 = sst [smem:[#allocation17_spill]] %s1950_s24  ;;  %p1680_p9 = por %p334_p6, %p333_p4 }
  0x18   : > { %p431_p10 = pnand %p1259_p7, %p430_p8  ;;  %s312_s27 = ssub.s32 %s1553_s19, %s1950_s24 }
  0x19   : > { %s1923_s26 = scalar_select %p1680_p9, 1, 0 }
  0x1a   : > { %s317_s28 = sadd.s32 1, %s1537_s15  ;;  %p315_p11 = scmp.eq.s32.totalorder %s312_s27, 0 }
  0x1b   : > { %1924 = sst [smem:[#allocation18_spill]] %s1923_s26  ;;  %434 = sbr.rel (%p431_p10) target bundleno = 1247 (0x4df), region = 60 }
  0x1c   : > { %s1688_s29 = scalar_select %p315_p11, %s1537_s15, %s317_s28  }
  0x1d   : > { %s1898_s30 = sand.u32 (!%p431_p10), 1, %s1533_s14   ;;  %p510_p12 = scmp.lt.s32.totalorder (!%p431_p10), %s1545_s17, 1 }
  0x1e   : > { %1925 = sst [smem:[#allocation19_spill]] %s1688_s29  ;;  %s1260_s11 = sshll.u32 (!%p431_p10), %s1898_s30, 4 }
  0x1f   : > { %p529_p13 = scmp.lt.s32.totalorder (!%p431_p10), %s1541_s16, 3  ;;  %p559_p0 = scmp.eq.s32.totalorder (!%p431_p10), %s1541_s16, 0 }
  0x20   : > { %s511_s12 = scalar_select %p510_p12, %s1545_s17, 1  ;;  %v1273_v0 = vld [vmem:[%s1894_s9] ss:$0 sm:$0xff] (%p559_p0)  ;;  %vm572_vm0 = vcmask (%p559_p0), 261120  }
  0x21   : > { %s1698_s21 = scalar_select %p529_p13, %s1541_s16, 3 }
  0x22   : > { %s1299_s22 = sshll.u32 %s511_s12, 3  ;;  %s1926_s0 = sld [smem:[#allocation20_spill]] }
  0x23   : > { %s1927_s1 = sld [smem:[#allocation21_spill]]  ;;  %s1301_s18 = sshll.u32 %s1698_s21, 4 }
  0x24   : > { %s1928_s2 = sld [smem:[#allocation22_spill]]  ;;  %s541_s27 = scalar_lea.vmem %s1889_s4, %s1301_s18 }
  0x25   : > { %s544_s14 = scalar_lea.vmem %s1890_s5, %s1698_s21  ;;  %s552_s29 = scalar_lea.vmem %s1892_s7, %s1698_s21 }
  0x26   : > { %s1271_s26 = sshll.u32 %s1698_s21, 2  ;;  %s1740_s25 = scalar_lea.vmem [#allocation6], %s1260_s11 }
  0x27   : > { %564 = sbr.rel (!%p559_p0) target bundleno = 44 (0x2c), region = 64  ;;  %573 = vst.msk [vmem:[%s1740_s25] sm:$0xff] (%p559_p0), %vm572_vm0, %v1273_v0  ;;  %574 = vst.msk [vmem:[%s1740_s25 + $0x8] sm:$0xff] (%p559_p0), %vm572_vm0, %v1273_v0 }
  0x28   : > { %s1703_s24 = scalar_lea.vmem %s1926_s0, %s1299_s22 }
  0x29   : > { %s1708_s30 = scalar_lea.vmem %s1927_s1, %s1299_s22  ;;  %s1728_s22 = scalar_lea.vmem %s1891_s6, %s1301_s18 }
  0x2a   : > { %s533_s10 = scalar_lea.vmem %s1928_s2, %s1301_s18  ;;  %s1738_s2 = scalar_lea.vmem %s1893_s8, %s1271_s26 }
  0x2c PF: > { %v1444_v1 = vld [vmem:[%s533_s10 + $0x8] sm:$0xff]   ;;  %v1559_v2 = vmov 0.0   ;;  %v1446_v4 = vld [vmem:[%s533_s10] sm:$0xff]   ;;  %vm1560_vm1 = vmmov 0   ;;  %vm608_vm2 = vcmask 261120   ;;  %vm669_vm3 = vcmask 64512   ;;  %s1929_s16 = scalar_lea.vmem %s1888_s3, %s1698_s21 }
  0x2d   : > { %1323 = vmatprep.subr.bf16.mxu0 %v1559_v2  ;;  %1331 = vmatprep.subr.bf16.mxu1 %v1559_v2  ;;  %v1445_v3 = vld [vmem:[%s541_s27 + $0x8] sm:$0xff]   ;;  %v1447_v5 = vld [vmem:[%s541_s27] sm:$0xff]   ;;  %670 = vst.msk [vmem:[#allocation5] sm:$0xff] %vm669_vm3, %v1559_v2  ;;  %671 = vst.msk [vmem:[#allocation5 + $0x8] sm:$0xff] %vm669_vm3, %v1559_v2  ;;  %vm661_vm4 = vcmask 60416   ;;  %vm664_vm5 = vcmask 7168  }
  0x2e   : > { %1324 = vmatpush3.bf16.msra.mxu0 %v1444_v1  ;;  %1327 = vmatprep.mubr.msk.bf16.mxu0 %vm1560_vm1, %v1559_v2  ;;  %v1448_v6 = vld [vmem:[%s1703_s24] sm:$0xff]   ;;  %v1451_v27 = vld [vmem:[%s1728_s22 + $0x8] sm:$0xff]   ;;  %v1561_v28 = vmov -inf   ;;  %667 = vst.msk [vmem:[#allocation4] sm:$0xff] %vm664_vm5, %v1559_v2  ;;  %668 = vst.msk [vmem:[#allocation4 + $0x8] sm:$0xff] %vm664_vm5, %v1559_v2  ;;  %vm870_vm6 = vcmask 130048  }
  0x2f   : > { %1332 = vmatpush3.bf16.msra.mxu1 %v1445_v3  ;;  %1325 = vmatprep.subr.bf16.mxu0 %v1559_v2  ;;  %v1449_v7 = vld [vmem:[%s1708_s30] sm:$0xff]   ;;  %665 = vst.msk [vmem:[#allocation3] sm:$0xff] %vm664_vm5, %v1561_v28  ;;  %666 = vst.msk [vmem:[#allocation3 + $0x8] sm:$0xff] %vm664_vm5, %v1561_v28  ;;  %v1562_v36 = vmov 0   ;;  %vm1009_vm7 = vcmask 1043456   ;;  %s1307_s11 = sshll.u32 %s1545_s17, 8 }
  0x30   : > { %1333 = vmatprep.subr.bf16.mxu1 %v1559_v2  ;;  %1335 = vmatprep.mubr.msk.bf16.mxu1 %vm1560_vm1, %v1559_v2  ;;  %v1274_v8 = vld [vmem:[%s1929_s16] ss:$0 sm:$0xff]  ;;  %s1074_s21 = sshll.u32 %s1740_s25, 4  ;;  %s1932_s19 = sld [smem:[#allocation23_spill]]  ;;  %s1828_s21 = int_to_ptr.vmem [resolvable:$true] %s1074_s21 }
  0x31   : > { %v1281_v14 = vld [vmem:[%s544_s14] ss:$0 sm:$0xff]  ;;  %1442 = vset.pattern.permute.xlu1 %v1562_v36  ;;  %1443 = vset.pattern.permute.xlu0 %v1562_v36  ;;  %s1563_s13 = smov [#allocation6]  }
  0x32   : > { %1326 = vmatpush3.bf16.msra.mxu0 %v1446_v4  ;;  %v1452_v29 = vld [vmem:[%s1728_s22] sm:$0xff]   ;;  %s1469_s20 = sshll.u32 %s1563_s13, 4  ;;  %s1470_s20 = int_to_ptr.vmem [resolvable:$false] %s1469_s20 }
  0x33   : > { %1334 = vmatpush3.bf16.msra.mxu1 %v1447_v5  ;;  %1339 = vmatprep.subr.bf16.mxu0 %v1559_v2  ;;  %v1286_v45 = vld [vmem:[%s552_s29] ss:$0 sm:$0xff]  ;;  %s1465_s29 = scalar_lea.vmem %s1828_s21, 256  ;;  %s1471_s0 = scalar_lea.vmem %s1470_s20, 512 }
  0x34   : > { %1347 = vmatprep.subr.bf16.mxu1 %v1559_v2  ;;  %p1466_p1 = scmp.ne.s32.totalorder %s1828_s21, %s1465_s29  ;;  %p1472_p5 = scmp.lt.s32.totalorder %s1828_s21, %s1470_s20 }
  0x35   : > { %1328 = vmatmul.mubr.msk.bf16.vlgmr.msra.gmra.mxu0 %vm608_vm2, %v1448_v6  ;;  %v901_v4 = vld [vmem:[#allocation4] sm:$0xff]  ;;  %p1473_p6 = scmp.lt.s32.totalorder %s1471_s0, %s1465_s29 }
  0x36   : > { %1336 = vmatmul.mubr.msk.bf16.vlgmr.msra.gmra.mxu1 %vm608_vm2, %v1449_v7  ;;  %1343 = vmatprep.mubr.msk.bf16.mxu0 %vm1560_vm1, %v1559_v2  ;;  %v868_v37 = vld [vmem:[#allocation3] sm:$0xff]  ;;  %v869_v40 = vld [vmem:[#allocation3 + $0x8] sm:$0xff]  ;;  %s1933_s23 = smov %s1932_s19  ;;  %s1826_s22 = scalar_lea.hbm %s1932_s19, %s1307_s11 }
  0x37   : > { %1349 = vmatprep.mubr.msk.bf16.mxu1 %vm1560_vm1, %v1559_v2  ;;  %1340 = vmatpush3.bf16.msra.mxu0 %v1451_v27  ;;  %p1467_p2 = pnand %p1466_p1, %p1670_p3  ;;  %p1474_p7 = por %p1473_p6, %p1472_p5 }
  0x38   : > { %1341 = vmatprep.subr.bf16.mxu0 %v1559_v2 }
  0x39   : > { %p1468_p4 = pneg %p1467_p2 }
  0x3b   : > { %1342 = vmatpush3.bf16.msra.mxu0 %v1452_v29  ;;  %p1475_p8 = pnand %p1474_p7, %p1468_p4 }
  0x3c   : > { %1353 = vmatprep.subr.bf16.mxu0 %v1559_v2 }
  0x3e   : > { %1344 = vmatmul.mubr.msk.bf16.vlgmr.msra.gmra.mxu0 %vm608_vm2, %v1449_v7  ;;  %v902_v7 = vld [vmem:[#allocation4 + $0x8] sm:$0xff] }
  0x3f   : > { %1355 = vmatprep.mubr.msk.bf16.mxu0 %vm1560_vm1, %v1559_v2 }
  0xf5   : > { %v646_v9 = vpop.f32.mrf.mxu0 }
  0xf6   : > { %v647_v10 = vadd.f32 %v1274_v8, %v646_v9  ;;  %v740_v11 = vpop.f32.mrf.mxu1 }
  0xf7   : > { %v1329_v12 = vpop.f32.mrf.mxu0  ;;  %v741_v19 = vadd.f32 %v1281_v14, %v740_v11 }
  0xf8   : > { %v1305_v13 = vpack.c.bf16 %v647_v10, %v647_v10  ;;  %v1337_v15 = vpop.f32.mrf.mxu1 }
  0xf9   : > { %v649_v16 = vpop.f32.mrf.mxu0 }
  0xfa   : > { %662 = vst.msk [vmem:[#allocation2] sm:$0xf] %vm661_vm4, %v1305_v13  ;;  %v650_v17 = vadd.f32 %v1274_v8, %v649_v16  ;;  %v743_v18 = vpop.f32.mrf.mxu1 }
  0xfb   : > { %v744_v20 = vadd.f32 %v1281_v14, %v743_v18  ;;  %v1330_v21 = vpop.f32.mrf.mxu0  ;;  %v1005_v14 = vld [vmem:[%s1738_s2] sm:$0xf]  ;;  %v916_v18 = vld [vmem:[#allocation5] sm:$0xff]  ;;  %s1930_s2 = sld [smem:[#allocation10_spill]] }
  0xfc   : > { %v1306_v22 = vpack.c.bf16 %v650_v17, %v650_v17  ;;  %v1338_v23 = vpop.f32.mrf.mxu1  ;;  %v1011_v15 = vsel %vm1009_vm7, %v1005_v14, 0  ;;  %v917_v21 = vld [vmem:[#allocation5 + $0x8] sm:$0xff] }
  0xfd   : > { %v747_v24 = vpack.c.bf16 %v744_v20, %v741_v19 }
  0xfe   : > { %663 = vst.msk [vmem:[#allocation2 + $0x4] sm:$0xf] %vm661_vm4, %v1306_v22  ;;  %v805_v46 = vpop.f32.mrf.mxu0 }
  0xff   : > { %v825_v25 = vsel %vm669_vm3, %v747_v24, 0  ;;  %v806_v48 = vadd.f32 %v1286_v45, %v805_v46 }
 0x100   : > { %1348 = vmatpush3.bf16.xpose.msra.mxu1 %v825_v25  ;;  %v1345_v47 = vpop.f32.mrf.mxu0 }
 0x101   : > { %1359 = vmatprep.subr.bf16.mxu1 %v1559_v2  ;;  %s1934_s17 = sand.u32 1, %s1930_s2  }
 0x102   : > { %v808_v49 = vpop.f32.mrf.mxu0  ;;  %s1834_s15 = scalar_lea.sflag [#allocation7], %s1934_s17 }
 0x103   : > { %v809_v50 = vadd.f32 %v1286_v45, %v808_v49 }
 0x104   : > { %v1346_v51 = vpop.f32.mrf.mxu0 }
 0x105   : > { %v1450_v26 = vld [vmem:[#allocation2] sm:$0xff]   ;;  %v812_v52 = vpack.c.bf16 %v809_v50, %v806_v48 }
 0x107   : > { %1350 = vmatmul.mubr.msk.bf16.vlgmr.msra.gmra.mxu1 %vm669_vm3, %v1450_v26  ;;  %1354 = vmatpush3.bf16.msra.mxu0 %v812_v52 }
 0x108   : > { %1361 = vmatprep.mubr.msk.bf16.mxu1 %vm1560_vm1, %v1559_v2  ;;  %1360 = vmatpush3.bf16.msra.mxu1 %v1011_v15 }
 0x1c7   : > { %v861_v30 = vpop.f32.mrf.mxu1 }
 0x1c8   : > { %v871_v31 = vsel %vm870_vm6, %v861_v30, -inf }
 0x1c9   : > { %872 = vmax.xlane.f32.xlu0 %v871_v31  ;;  %v1351_v32 = vpop.f32.mrf.mxu1 }
 0x1cb   : > { %v864_v33 = vpop.f32.mrf.mxu1 }
 0x1cc   : > { %v874_v34 = vsel %vm870_vm6, %v864_v33, -inf }
 0x1cd   : > { %875 = vmax.xlane.f32.xlu0 %v874_v34  ;;  %v1352_v35 = vpop.f32.mrf.mxu1 }
 0x252   : > { %v873_v38 = vpop.xlane.xlu0 %872 }
 0x253   : > { %v877_v39 = vmax.f32 %v868_v37, %v873_v38 }
 0x255   : > { %v879_v41 = vsub.f32 %v868_v37, %v877_v39  ;;  %979 = vst.msk [vmem:[#allocation3] sm:$0xff] %vm664_vm5, %v877_v39  ;;  %887 = vperm.xlu1 %1442, %v877_v39   ;;  %v1002_v37 = vld [vmem:[%s1740_s25] sm:$0xff] }
 0x256   : > { %v876_v42 = vpop.xlane.xlu0 %875 }
 0x257   : > { %v878_v43 = vmax.f32 %v869_v40, %v876_v42  ;;  %v881_v1 = vmul.f32 1.442695, %v879_v41  ;;  %v1003_v41 = vld [vmem:[%s1740_s25 + $0x8] sm:$0xff] }
 0x259   : > { %v880_v44 = vsub.f32 %v869_v40, %v878_v43  ;;  %980 = vst.msk [vmem:[#allocation3 + $0x8] sm:$0xff] %vm664_vm5, %v878_v43  ;;  %892 = vperm.xlu1 %1442, %v878_v43  }
 0x25b   : > { %v883_v62 = vmul.f32 1.442695, %v880_v44 }
 0x2d0   : > { %v888_v53 = vpop.permute.xlu1 %887 }
 0x2d1   : > { %v895_v54 = vsub.f32 %v861_v30, %v888_v53 }
 0x2d3   : > { %v897_v55 = vmul.f32 1.442695, %v895_v54 }
 0x2d4   : > { %v893_v56 = vpop.permute.xlu1 %892 }
 0x2d5   : > { %1453 = vpow2.f32 %v897_v55  ;;  %v896_v57 = vsub.f32 %v864_v33, %v893_v56 }
 0x2d7   : > { %v899_v58 = vmul.f32 1.442695, %v896_v57 }
 0x2d9   : > { %1455 = vpow2.f32 %v899_v58 }
 0x2da   : > { %1457 = vpow2.f32 %v883_v62 }
 0x2db   : > { %1459 = vpow2.f32 %v881_v1 }
 0x2e2   : > { %v1454_v59 = vpop.eup %1453 }
 0x2e3   : > { %v905_v60 = vsel %vm870_vm6, %v1454_v59, 0.0 }
 0x2e4   : > { %906 = vadd.xlane.f32.xlu0 %v905_v60 }
 0x2e6   : > { %v1456_v61 = vpop.eup %1455 }
 0x2e7   : > { %v908_v63 = vsel %vm870_vm6, %v1456_v61, 0.0  ;;  %v930_v0 = vpack.c.bf16 %v1456_v61, %v1454_v59  ;;  %v1458_v2 = vpop.eup %1457 }
 0x2e8   : > { %909 = vadd.xlane.f32.xlu1 %v908_v63  ;;  %v1460_v3 = vpop.eup %1459  ;;  %v904_v9 = vmul.f32 %v1458_v2, %v902_v7 }
 0x2e9   : > { %1356 = vmatmul.mubr.msk.bf16.vlgmr.msra.gmra.mxu0 %vm870_vm6, %v930_v0  ;;  %v903_v5 = vmul.f32 %v1460_v3, %v901_v4 }
 0x2f9   : > { %925 = vperm.xlu1 %1442, %v1458_v2  }
 0x2fa   : > { %920 = vperm.xlu0 %1443, %v1460_v3  }
 0x36d   : > { %v907_v6 = vpop.xlane.xlu0 %906 }
 0x36e   : > { %v911_v8 = vadd.f32 %v907_v6, %v903_v5 }
 0x370   : > { %914 = vst.msk [vmem:[#allocation4] sm:$0xff] %vm664_vm5, %v911_v8 }
 0x371   : > { %v910_v10 = vpop.xlane.xlu1 %909 }
 0x372   : > { %v912_v11 = vadd.f32 %v910_v10, %v904_v9 }
 0x374   : > { %915 = vst.msk [vmem:[#allocation4 + $0x8] sm:$0xff] %vm664_vm5, %v912_v11 }
 0x375   : > { %v921_v19 = vpop.permute.xlu0 %920  ;;  %v926_v22 = vpop.permute.xlu1 %925 }
 0x376   : > { %v928_v20 = vmul.f32 %v921_v19, %v916_v18  ;;  %v929_v26 = vmul.f32 %v926_v22, %v917_v21 }
 0x377   : > { %v986_v12 = vld [vmem:[#allocation4] sm:$0xff] }
 0x378   : > { %1461 = vrcp.f32 %v986_v12 }
 0x37b   : > { %v987_v13 = vld [vmem:[#allocation4 + $0x8] sm:$0xff] }
 0x37c   : > { %1463 = vrcp.f32 %v987_v13 }
 0x385   : > { %v1462_v16 = vpop.eup %1461 }
 0x386   : > { %992 = vperm.xlu0 %1443, %v1462_v16  }
 0x389   : > { %v1464_v17 = vpop.eup %1463 }
 0x38a   : > { %997 = vperm.xlu0 %1443, %v1464_v17  }
 0x3a9   : > { %v968_v23 = vpop.f32.mrf.mxu0 }
 0x3aa   : > { %v975_v24 = vadd.f32 %v968_v23, %v928_v20 }
 0x3ab   : > { %v1357_v25 = vpop.f32.mrf.mxu0 }
 0x3ac   : > { %977 = vst.msk [vmem:[#allocation5] sm:$0xff] %vm669_vm3, %v975_v24 }
 0x3ad   : > { %v971_v27 = vpop.f32.mrf.mxu0 }
 0x3ae   : > { %v976_v28 = vadd.f32 %v971_v27, %v929_v26 }
 0x3af   : > { %v1358_v29 = vpop.f32.mrf.mxu0 }
 0x3b0   : > { %978 = vst.msk [vmem:[#allocation5 + $0x8] sm:$0xff] %vm669_vm3, %v976_v28 }
 0x3b3   : > { %v984_v31 = vld [vmem:[#allocation5] sm:$0xff] }
 0x3b7   : > { %v985_v33 = vld [vmem:[#allocation5 + $0x8] sm:$0xff] }
 0x401   : > { %v993_v30 = vpop.permute.xlu0 %992 }
 0x402   : > { %v1000_v34 = vmul.f32 %v993_v30, %v984_v31 }
 0x405   : > { %v998_v32 = vpop.permute.xlu0 %997 }
 0x406   : > { %v1001_v35 = vmul.f32 %v998_v32, %v985_v33 }
 0x408   : > { %v1004_v36 = vpack.c.bf16 %v1001_v35, %v1000_v34 }
 0x40a   : > { %1362 = vmatmul.mubr.msk.bf16.vlgmr.msra.gmra.mxu1 %vm669_vm3, %v1004_v36 }
 0x4ca   : > { %v1047_v38 = vpop.f32.mrf.mxu1 }
 0x4cb   : > { %v1054_v39 = vadd.f32 %v1047_v38, %v1002_v37 }
 0x4cc   : > { %v1363_v40 = vpop.f32.mrf.mxu1 }
 0x4cd   : > { %1056 = vst.msk [vmem:[%s1740_s25] sm:$0xff] %vm608_vm2, %v1054_v39 }
 0x4ce   : > { %v1050_v42 = vpop.f32.mrf.mxu1 }
 0x4cf   : > { %v1055_v43 = vadd.f32 %v1050_v42, %v1003_v41 }
 0x4d0   : > { %v1364_v44 = vpop.f32.mrf.mxu1 }
 0x4d1   : > { %1057 = vst.msk [vmem:[%s1740_s25 + $0x8] sm:$0xff] %vm608_vm2, %v1055_v43 }
 0x4d2   : > { %1478 = shalt.err (!%p1475_p8)
}
 0x4d3   : > { %s1479_s25 = scalar_lea.hbm %s1826_s22, 256  ;;  %s1483_s10 = scalar_lea.hbm %s1933_s23, 512 }
 0x4d4   : > { %p1480_p10 = scmp.ne.s32.totalorder %s1826_s22, %s1479_s25  ;;  %p1484_p13 = scmp.lt.s32.totalorder %s1826_s22, %s1933_s23 }
 0x4d5   : > { %p1485_p0 = scmp.lt.s32.totalorder %s1483_s10, %s1479_s25 }
 0x4d6   : > { %p1481_p11 = pnand %p1480_p10, %p1670_p3 }
 0x4d7   : > { %p1486_p1 = por %p1485_p0, %p1484_p13 }
 0x4d8   : > { %p1482_p12 = pneg %p1481_p11 }
 0x4da   : > { %p1487_p2 = pnand %p1486_p1, %p1482_p12 }
 0x4dc   : > { %1490 = shalt.err (!%p1487_p2)
}
 0x4dd   : > { %s1564_s24 = smov 128   ;;  %s1565_s14 = smov 8  }
 0x4de   : > { %1365 = dma.vmem_to_hbm [thread:$0]  (%p1670_p3), %s1828_s21, 256, %s1826_s22, %s1834_s15, %s1564_s24, %s1564_s24, %s1565_s14  }
 0x4df PF: > { %s1935_s26 = sld [smem:[#allocation14_spill]] }
 0x4e0   : > { %s1936_s2 = sld [smem:[#allocation9_spill]] }
 0x4e5   : > { %p1371_p4 = scmp.ge.s32.totalorder %s1935_s26, 2 }
 0x4e6   : > { %s1089_s27 = sand.u32 1, %s1936_s2  }
 0x4e7   : > { %p1368_p5 = pnand %p1371_p4, %p1680_p9  ;;  %s1090_s28 = scalar_lea.sflag [#allocation7], %s1089_s27 }
 0x4e9   : > { %p1369_p6 = pneg %p1368_p5 }
 0x4eb   : > { %1524 = dma.done.wait (%p1369_p6), %s1090_s28, 256  }
 0x4ec   : > { %1526 = vsyncadd (%p1369_p6), %s1090_s28, 4294967040  ;;  %s23_s20 = sadd.s32 1, %s1935_s26   ;;  %s1938_s13 = sld [smem:[#allocation10_spill]] }
 0x4ed   : > { %p20_p7 = scmp.ge.s32.totalorder %s23_s20, 10   ;;  %s1939_s14 = sld [smem:[#allocation11_spill]] }
 0x4ee   : > { %s1940_s15 = sld [smem:[#allocation19_spill]] }
 0x4ef   : > { %s1941_s16 = sld [smem:[#allocation12_spill]]  ;;  %22 = sbr.rel (!%p20_p7) target bundleno = 10 (0xa), region = 131 }
 0x4f0   : > { %s1942_s17 = sld [smem:[#allocation13_spill]] }
 0x4f1   : > { %s1943_s18 = sld [smem:[#allocation15_spill]] }
 0x4f2   : > { %s1944_s19 = sld [smem:[#allocation17_spill]] }
 0x4f4   :  { %1095 = vsyncpa [#allocation7], 1 }
 0x4f5   :  { %1097 = vsyncpa [#allocation7 + $0x1], 1 }

</bundles_post_ra>
